<compile_context>
chip_gen: v6e
topology: v6e:2x2x1
jax: 0.10.0
libtpu: 0.0.40
codegen_flags: <defaults>
</compile_context>

<pallas_src>
import functools

import jax
import jax.numpy as jnp
from jax.experimental import pallas as pl
from jax.experimental.pallas import tpu as pltpu

LANE = 128
NUM_CLASSES = 10
H0, H1 = 100, 50                      # true hidden widths of ModelB
H0_PAD, H1_PAD, OUT_PAD = 128, 128, 128
NEG_BIG = -1e30                       # finite "-inf" baked into padded fc2 bias


def _round_up(n, m):
    return ((n + m - 1) // m) * m


def modelb_kernel(x_ref, w0_ref, b0_ref, w1_ref, b1_ref, w2_ref, b2_ref, o_ref):
    # x_ref:  (TILE_B, K_pad)   bf16
    # w0_ref: (K_pad, 128) bf16, b0_ref: (1, 128) f32
    # w1_ref: (128, 128)   bf16, b1_ref: (1, 128) f32
    # w2_ref: (128, 128)   bf16, b2_ref: (1, 128) f32  (padded cols = NEG_BIG)
    # o_ref:  (TILE_B, 128) f32  -- log-probs in cols [0, 10), junk after
    x = x_ref[...]

    h0 = jnp.dot(x, w0_ref[...], preferred_element_type=jnp.float32) + b0_ref[...]
    h0 = jnp.maximum(h0, 0.0)                                    # relu (f32)

    h1 = jnp.dot(h0.astype(jnp.bfloat16), w1_ref[...],
                 preferred_element_type=jnp.float32) + b1_ref[...]
    h1 = jnp.maximum(h1, 0.0)                                    # relu (f32)

    # padded logit columns come out ~NEG_BIG via the bias -> exp() == 0 below
    logits = jnp.dot(h1.astype(jnp.bfloat16), w2_ref[...],
                     preferred_element_type=jnp.float32) + b2_ref[...]

    # numerically stable log_softmax over dim=1
    m = jnp.max(logits, axis=1, keepdims=True)
    shifted = logits - m
    lse = jnp.log(jnp.sum(jnp.exp(shifted), axis=1, keepdims=True))
    o_ref[...] = (shifted - lse).astype(o_ref.dtype)


def prepare_params(params, image_size):
    """One-time weight prep: pad to lane-dense widths, cast matmul weights to bf16.

    The padded columns of the fc2 bias are set to NEG_BIG so padded logit
    lanes are excluded from the softmax reduction without any in-kernel mask.
    """
    w0, b0, w1, b1, w2, b2 = params
    k_pad = _round_up(image_size, LANE)

    w0p = jnp.zeros((k_pad, H0_PAD), jnp.float32).at[:image_size, :H0].set(w0)
    b0p = jnp.zeros((1, H0_PAD), jnp.float32).at[:, :H0].set(b0.reshape(1, H0))

    w1p = jnp.zeros((H0_PAD, H1_PAD), jnp.float32).at[:H0, :H1].set(w1)
    b1p = jnp.zeros((1, H1_PAD), jnp.float32).at[:, :H1].set(b1.reshape(1, H1))

    w2p = jnp.zeros((H1_PAD, OUT_PAD), jnp.float32).at[:H1, :NUM_CLASSES].set(w2)
    b2p = jnp.full((1, OUT_PAD), NEG_BIG, jnp.float32).at[:, :NUM_CLASSES].set(
        b2.reshape(1, NUM_CLASSES))

    return (w0p.astype(jnp.bfloat16), b0p,
            w1p.astype(jnp.bfloat16), b1p,
            w2p.astype(jnp.bfloat16), b2p)


@functools.partial(jax.jit, static_argnums=(2,))
def modelb_forward(x, prepped_params, image_size):
    """x: [N, C, H, W] (trailing dims flatten to image_size). Returns [N, 10] log-probs."""
    w0p, b0p, w1p, b1p, w2p, b2p = prepped_params
    k_pad = w0p.shape[0]

    # flatten exactly like torch's x.view(-1, image_size)
    x2d = x.reshape(-1, image_size).astype(jnp.float32)
    batch = x2d.shape[0]

    # pad feature dim to lane multiple (zeros contribute nothing to the dot)
    if k_pad != image_size:
        x2d = jnp.pad(x2d, ((0, 0), (0, k_pad - image_size)))

    # batch tiling: multiple of 16 (bf16 sublane packing), up to 512 rows/step
    tile_b = min(512, _round_up(batch, 16))
    padded_batch = _round_up(batch, tile_b)
    if padded_batch != batch:
        x2d = jnp.pad(x2d, ((0, padded_batch - batch), (0, 0)))

    x_bf16 = x2d.astype(jnp.bfloat16)          # halves HBM traffic for x
    grid = (padded_batch // tile_b,)

    resident = lambda shape: pl.BlockSpec(shape, lambda i: (0, 0))

    out_padded = pl.pallas_call(
        modelb_kernel,
        out_shape=jax.ShapeDtypeStruct((padded_batch, OUT_PAD), jnp.float32),
        grid=grid,
        in_specs=[
            pl.BlockSpec((tile_b, k_pad), lambda i: (i, 0)),   # x tiles over batch
            resident(w0p.shape), resident(b0p.shape),
            resident(w1p.shape), resident(b1p.shape),
            resident(w2p.shape), resident(b2p.shape),
        ],
        out_specs=pl.BlockSpec((tile_b, OUT_PAD), lambda i: (i, 0)),
        compiler_params=pltpu.CompilerParams(
            dimension_semantics=("parallel",),
            vmem_limit_bytes=32 << 20,
        ),
    )(x_bf16, w0p, b0p, w1p, b1p, w2p, b2p)

    return out_padded[:batch, :NUM_CLASSES]


def init_params(image_size, key):
    """Deterministic init mimicking nn.Linear's uniform(-1/sqrt(fan_in), +1/sqrt(fan_in))."""
    def linear(key, fan_in, fan_out):
        kw, kb = jax.random.split(key)
        bound = 1.0 / jnp.sqrt(jnp.float32(fan_in))
        # stored as (fan_in, fan_out) == torch weight transposed
        w = jax.random.uniform(kw, (fan_in, fan_out), jnp.float32, -bound, bound)
        b = jax.random.uniform(kb, (1, fan_out), jnp.float32, -bound, bound)
        return w, b

    k0, k1, k2 = jax.random.split(key, 3)
    w0, b0 = linear(k0, image_size, H0)
    w1, b1 = linear(k1, H0, H1)
    w2, b2 = linear(k2, H1, NUM_CLASSES)
    return (w0, b0, w1, b1, w2, b2)


def reference_forward(x, params):
    """Pure-JAX f32 reference for a sanity check."""
    w0, b0, w1, b1, w2, b2 = params
    image_size = w0.shape[0]
    h = x.reshape(-1, image_size).astype(jnp.float32)
    h = jnp.maximum(h @ w0 + b0, 0.0)
    h = jnp.maximum(h @ w1 + b1, 0.0)
    logits = h @ w2 + b2
    return jax.nn.log_softmax(logits, axis=1)


if __name__ == "__main__":
    key = jax.random.PRNGKey(0)
    kx, kp = jax.random.split(key)

    # Small image: 1x16x16 -> image_size = 256, batch = 8
    batch, C, H, W = 8, 1, 16, 16
    image_size = C * H * W

    x = jax.random.normal(kx, (batch, C, H, W), jnp.float32)
    params = init_params(image_size, kp)
    prepped = prepare_params(params, image_size)

    out = modelb_forward(x, prepped, image_size)
    out = jax.block_until_ready(out)

    ref = reference_forward(x, params)
    assert out.shape == (batch, NUM_CLASSES), out.shape
    # bf16 MXU inputs with f32 accumulation -> allow a small tolerance vs f32 ref
    assert jnp.allclose(out, ref, atol=5e-2, rtol=5e-2), "mismatch vs reference"
    # log_softmax rows should sum (in prob space) to ~1
    assert jnp.allclose(jnp.sum(jnp.exp(out), axis=1), 1.0, atol=1e-4)

    print("KERNEL_OK")
</pallas_src>

<mosaic_0001>
module attributes {stable_mosaic.version = 11 : i64} {
  func.func @modelb_kernel(%arg0: i32, %arg1: memref<16x256xbf16, #tpu.memory_space<vmem>>, %arg2: memref<256x128xbf16, #tpu.memory_space<vmem>>, %arg3: memref<1x128xf32, #tpu.memory_space<vmem>>, %arg4: memref<128x128xbf16, #tpu.memory_space<vmem>>, %arg5: memref<1x128xf32, #tpu.memory_space<vmem>>, %arg6: memref<128x128xbf16, #tpu.memory_space<vmem>>, %arg7: memref<1x128xf32, #tpu.memory_space<vmem>>, %arg8: memref<16x128xf32, #tpu.memory_space<vmem>>) attributes {dimension_semantics = [#tpu.dimension_semantics<parallel>], iteration_bounds = array<i64: 1>, scalar_prefetch = 0 : i64, scratch_operands = 0 : i64, tpu.core_type = #tpu.core_type<tc>, window_params = [{transform_indices = @transform_0, window_bounds = array<i64: 16, 256>}, {pipeline_mode = #tpu.pipeline_mode<synchronous>, transform_indices = @transform_1, window_bounds = array<i64: 256, 128>}, {pipeline_mode = #tpu.pipeline_mode<synchronous>, transform_indices = @transform_2, window_bounds = array<i64: 1, 128>}, {pipeline_mode = #tpu.pipeline_mode<synchronous>, transform_indices = @transform_3, window_bounds = array<i64: 128, 128>}, {pipeline_mode = #tpu.pipeline_mode<synchronous>, transform_indices = @transform_4, window_bounds = array<i64: 1, 128>}, {pipeline_mode = #tpu.pipeline_mode<synchronous>, transform_indices = @transform_5, window_bounds = array<i64: 128, 128>}, {pipeline_mode = #tpu.pipeline_mode<synchronous>, transform_indices = @transform_6, window_bounds = array<i64: 1, 128>}, {transform_indices = @transform_7, window_bounds = array<i64: 16, 128>}]} {
    %c0 = arith.constant 0 : index
    %c0_0 = arith.constant 0 : index
    %0 = vector.load %arg1[%c0, %c0_0] : memref<16x256xbf16, #tpu.memory_space<vmem>>, vector<16x256xbf16>
    %c0_1 = arith.constant 0 : index
    %c0_2 = arith.constant 0 : index
    %1 = vector.load %arg2[%c0_1, %c0_2] : memref<256x128xbf16, #tpu.memory_space<vmem>>, vector<256x128xbf16>
    %cst = arith.constant dense<0.000000e+00> : vector<16x128xf32>
    %2 = tpu.matmul %0, %1, %cst {dimension_numbers = #tpu.dot_dimension_numbers<[1], [0], [0], [1], [0, 0, 1, 1], [], []>} : vector<16x256xbf16>, vector<256x128xbf16>, vector<16x128xf32> -> vector<16x128xf32>
    %c0_3 = arith.constant 0 : index
    %c0_4 = arith.constant 0 : index
    %3 = vector.load %arg3[%c0_3, %c0_4] : memref<1x128xf32, #tpu.memory_space<vmem>>, vector<1x128xf32>
    %4 = vector.broadcast %3 : vector<1x128xf32> to vector<16x128xf32>
    %5 = arith.addf %2, %4 : vector<16x128xf32>
    %cst_5 = arith.constant 0.000000e+00 : f32
    %6 = vector.broadcast %cst_5 : f32 to vector<16x128xf32>
    %7 = arith.maximumf %5, %6 : vector<16x128xf32>
    %8 = arith.truncf %7 : vector<16x128xf32> to vector<16x128xbf16>
    %c0_6 = arith.constant 0 : index
    %c0_7 = arith.constant 0 : index
    %9 = vector.load %arg4[%c0_6, %c0_7] : memref<128x128xbf16, #tpu.memory_space<vmem>>, vector<128x128xbf16>
    %cst_8 = arith.constant dense<0.000000e+00> : vector<16x128xf32>
    %10 = tpu.matmul %8, %9, %cst_8 {dimension_numbers = #tpu.dot_dimension_numbers<[1], [0], [0], [1], [0, 0, 1, 1], [], []>} : vector<16x128xbf16>, vector<128x128xbf16>, vector<16x128xf32> -> vector<16x128xf32>
    %c0_9 = arith.constant 0 : index
    %c0_10 = arith.constant 0 : index
    %11 = vector.load %arg5[%c0_9, %c0_10] : memref<1x128xf32, #tpu.memory_space<vmem>>, vector<1x128xf32>
    %12 = vector.broadcast %11 : vector<1x128xf32> to vector<16x128xf32>
    %13 = arith.addf %10, %12 : vector<16x128xf32>
    %cst_11 = arith.constant 0.000000e+00 : f32
    %14 = vector.broadcast %cst_11 : f32 to vector<16x128xf32>
    %15 = arith.maximumf %13, %14 : vector<16x128xf32>
    %16 = arith.truncf %15 : vector<16x128xf32> to vector<16x128xbf16>
    %c0_12 = arith.constant 0 : index
    %c0_13 = arith.constant 0 : index
    %17 = vector.load %arg6[%c0_12, %c0_13] : memref<128x128xbf16, #tpu.memory_space<vmem>>, vector<128x128xbf16>
    %cst_14 = arith.constant dense<0.000000e+00> : vector<16x128xf32>
    %18 = tpu.matmul %16, %17, %cst_14 {dimension_numbers = #tpu.dot_dimension_numbers<[1], [0], [0], [1], [0, 0, 1, 1], [], []>} : vector<16x128xbf16>, vector<128x128xbf16>, vector<16x128xf32> -> vector<16x128xf32>
    %c0_15 = arith.constant 0 : index
    %c0_16 = arith.constant 0 : index
    %19 = vector.load %arg7[%c0_15, %c0_16] : memref<1x128xf32, #tpu.memory_space<vmem>>, vector<1x128xf32>
    %20 = vector.broadcast %19 : vector<1x128xf32> to vector<16x128xf32>
    %21 = arith.addf %18, %20 : vector<16x128xf32>
    %cst_17 = arith.constant dense<0xFF800000> : vector<16xf32>
    %22 = vector.multi_reduction <maximumf>, %21, %cst_17 [1] : vector<16x128xf32> to vector<16xf32>
    %23 = vector.shape_cast %22 : vector<16xf32> to vector<16x1xf32>
    %24 = vector.broadcast %23 : vector<16x1xf32> to vector<16x128xf32>
    %25 = arith.subf %21, %24 : vector<16x128xf32>
    %26 = math.exp %25 : vector<16x128xf32>
    %cst_18 = arith.constant dense<0.000000e+00> : vector<16xf32>
    %27 = vector.multi_reduction <add>, %26, %cst_18 [1] : vector<16x128xf32> to vector<16xf32>
    %28 = vector.shape_cast %27 : vector<16xf32> to vector<16x1xf32>
    %29 = math.log %28 : vector<16x1xf32>
    %30 = vector.broadcast %29 : vector<16x1xf32> to vector<16x128xf32>
    %31 = arith.subf %25, %30 : vector<16x128xf32>
    %c0_19 = arith.constant 0 : index
    %c0_20 = arith.constant 0 : index
    %32 = vector.load %arg8[%c0_19, %c0_20] : memref<16x128xf32, #tpu.memory_space<vmem>>, vector<16x128xf32>
    tpu.vector_store %arg8[%c0_19, %c0_20], %31 {strides = array<i32>} : memref<16x128xf32, #tpu.memory_space<vmem>>, vector<16x128xf32>,
    return
  }
  func.func @transform_0(%arg0: i32) -> (i32, i32) {
    %c0_i32 = arith.constant 0 : i32
    %c0_i32_0 = arith.constant 0 : i32
    return %arg0, %c0_i32 : i32, i32
  }
  func.func @transform_1(%arg0: i32) -> (i32, i32) {
    %c0_i32 = arith.constant 0 : i32
    %c0_i32_0 = arith.constant 0 : i32
    %c0_i32_1 = arith.constant 0 : i32
    return %c0_i32, %c0_i32_0 : i32, i32
  }
  func.func @transform_2(%arg0: i32) -> (i32, i32) {
    %c0_i32 = arith.constant 0 : i32
    %c0_i32_0 = arith.constant 0 : i32
    %c0_i32_1 = arith.constant 0 : i32
    return %c0_i32, %c0_i32_0 : i32, i32
  }
  func.func @transform_3(%arg0: i32) -> (i32, i32) {
    %c0_i32 = arith.constant 0 : i32
    %c0_i32_0 = arith.constant 0 : i32
    %c0_i32_1 = arith.constant 0 : i32
    return %c0_i32, %c0_i32_0 : i32, i32
  }
  func.func @transform_4(%arg0: i32) -> (i32, i32) {
    %c0_i32 = arith.constant 0 : i32
    %c0_i32_0 = arith.constant 0 : i32
    %c0_i32_1 = arith.constant 0 : i32
    return %c0_i32, %c0_i32_0 : i32, i32
  }
  func.func @transform_5(%arg0: i32) -> (i32, i32) {
    %c0_i32 = arith.constant 0 : i32
    %c0_i32_0 = arith.constant 0 : i32
    %c0_i32_1 = arith.constant 0 : i32
    return %c0_i32, %c0_i32_0 : i32, i32
  }
  func.func @transform_6(%arg0: i32) -> (i32, i32) {
    %c0_i32 = arith.constant 0 : i32
    %c0_i32_0 = arith.constant 0 : i32
    %c0_i32_1 = arith.constant 0 : i32
    return %c0_i32, %c0_i32_0 : i32, i32
  }
  func.func @transform_7(%arg0: i32) -> (i32, i32) {
    %c0_i32 = arith.constant 0 : i32
    %c0_i32_0 = arith.constant 0 : i32
    return %arg0, %c0_i32 : i32, i32
  }
}

</mosaic_0001>

<bundles_post_ra>
// kernel: modelb_forward.1
= control target key start
LH: loop header
LB: loop body
LE: loop exit
PB: predicated region body
PF: predicated region fallthrough
CT: control target
= control target key end

     0   :  { %v633_v1 = vmov 0.0   ;;  %vm634_vm0 = vmmov 0   ;;  %s810_s1 = inlined_call_operand.vmem [shape: bf16[256,128], index: 1, kind: input, shape index: {}]   ;;  %s811_s0 = inlined_call_operand.vmem [shape: bf16[16,256], index: 0, kind: input, shape index: {}]   ;;  %s812_s3 = inlined_call_operand.vmem [shape: bf16[128,128], index: 3, kind: input, shape index: {}]   ;;  %s813_s5 = inlined_call_operand.vmem [shape: bf16[128,128], index: 5, kind: input, shape index: {}]   ;;  %s814_s2 = inlined_call_operand.vmem [shape: f32[1,128], index: 2, kind: input, shape index: {}]   ;;  %s815_s4 = inlined_call_operand.vmem [shape: f32[1,128], index: 4, kind: input, shape index: {}]   ;;  %s816_s6 = inlined_call_operand.vmem [shape: f32[1,128], index: 6, kind: input, shape index: {}]   ;;  %s817_s7 = inlined_call_operand.vmem [shape: f32[16,128], index: 7, kind: output, shape index: {}]  }
   0x1   :  { %v590_v0 = vld [vmem:[%s810_s1 + $0x78] sm:$0xff]   ;;  %548 = vmatprep.subr.bf16.mxu1 %v633_v1  ;;  %v592_v3 = vld [vmem:[%s810_s1 + $0x70] sm:$0xff]   ;;  %v594_v5 = vld [vmem:[%s810_s1 + $0x68] sm:$0xff]   ;;  %564 = vmatprep.mubr.msk.bf16.mxu1 %vm634_vm0, %v633_v1 }
   0x2   :  { %v591_v2 = vld [vmem:[%s810_s1 + $0x38] sm:$0xff]   ;;  %508 = vmatprep.subr.bf16.mxu0 %v590_v0  ;;  %v593_v4 = vld [vmem:[%s810_s1 + $0x30] sm:$0xff]   ;;  %v595_v6 = vld [vmem:[%s810_s1 + $0x28] sm:$0xff]  }
   0x3   :  { %509 = vmatpush3.bf16.msra.mxu0 %v591_v2  ;;  %v596_v7 = vld [vmem:[%s810_s1 + $0x60] sm:$0xff]   ;;  %v598_v9 = vld [vmem:[%s810_s1 + $0x58] sm:$0xff]   ;;  %v600_v11 = vld [vmem:[%s810_s1 + $0x50] sm:$0xff]  }
   0x4   :  { %510 = vmatprep.subr.bf16.mxu0 %v592_v3  ;;  %v597_v8 = vld [vmem:[%s810_s1 + $0x20] sm:$0xff]   ;;  %v599_v10 = vld [vmem:[%s810_s1 + $0x18] sm:$0xff]   ;;  %v601_v12 = vld [vmem:[%s810_s1 + $0x10] sm:$0xff]  }
   0x5   :  { %v608_v13 = vld [vmem:[%s811_s0 + $0x4] ss:$8 sps:$4 sm:$0xff]   ;;  %v609_v14 = vld [vmem:[%s812_s3 + $0x38] sm:$0xff]   ;;  %v610_v16 = vld [vmem:[%s812_s3 + $0x30] sm:$0xff]  }
   0x6   :  { %v602_v15 = vld [vmem:[%s810_s1 + $0x48] sm:$0xff]   ;;  %206 = vmatprep.mubr.bf16.mxu0 %v608_v13  ;;  %549 = vmatpush3.bf16.msra.mxu1 %v609_v14  ;;  %v604_v18 = vld [vmem:[%s810_s1 + $0x40] sm:$0xff]   ;;  %v613_v23 = vld [vmem:[%s812_s3 + $0x18] sm:$0xff]  }
   0x7   :  { %511 = vmatpush3.bf16.msra.mxu0 %v593_v4  ;;  %v603_v17 = vld [vmem:[%s810_s1 + $0x8] sm:$0xff]   ;;  %550 = vmatprep.subr.bf16.mxu1 %v633_v1  ;;  %v605_v20 = vld [vmem:[%s810_s1] sm:$0xff]   ;;  %v614_v24 = vld [vmem:[%s812_s3 + $0x10] sm:$0xff]  }
   0x8   :  { %512 = vmatprep.subr.bf16.mxu0 %v594_v5  ;;  %v611_v19 = vld [vmem:[%s812_s3 + $0x28] sm:$0xff]   ;;  %v612_v21 = vld [vmem:[%s812_s3 + $0x20] sm:$0xff]   ;;  %v617_v27 = vld [vmem:[%s813_s5 + $0x38] sm:$0xff]  }
   0x9   :  { %v606_v22 = vld [vmem:[%s811_s0] ss:$8 sps:$4 sm:$0xff]   ;;  %v618_v28 = vld [vmem:[%s813_s5 + $0x30] sm:$0xff]   ;;  %v621_v31 = vld [vmem:[%s813_s5 + $0x18] sm:$0xff]  }
   0xa   :  { %551 = vmatpush3.bf16.msra.mxu1 %v610_v16  ;;  %v615_v25 = vld [vmem:[%s812_s3 + $0x8] sm:$0xff]   ;;  %v616_v26 = vld [vmem:[%s812_s3] sm:$0xff]   ;;  %v622_v44 = vld [vmem:[%s813_s5 + $0x10] sm:$0xff]  }
   0xb   :  { %513 = vmatpush3.bf16.msra.mxu0 %v595_v6  ;;  %552 = vmatprep.subr.bf16.mxu1 %v633_v1  ;;  %v619_v29 = vld [vmem:[%s813_s5 + $0x28] sm:$0xff]   ;;  %v620_v30 = vld [vmem:[%s813_s5 + $0x20] sm:$0xff]  }
   0xc   :  { %514 = vmatprep.subr.bf16.mxu0 %v596_v7  ;;  %v471_v35 = vld [vmem:[%s814_s2] ss:$0 sm:$0xff]  ;;  %v623_v45 = vld [vmem:[%s813_s5 + $0x8] sm:$0xff]  }
   0xd   :  { %v624_v46 = vld [vmem:[%s813_s5] sm:$0xff]  }
   0xe   :  { %553 = vmatpush3.bf16.msra.mxu1 %v611_v19  ;;  %v490_v47 = vld [vmem:[%s815_s4] ss:$0 sm:$0xff] }
   0xf   :  { %515 = vmatpush3.bf16.msra.mxu0 %v597_v8  ;;  %554 = vmatprep.subr.bf16.mxu1 %v633_v1  ;;  %v499_v57 = vld [vmem:[%s816_s6] ss:$0 sm:$0xff] }
  0x10   :  { %516 = vmatprep.subr.bf16.mxu0 %v598_v9 }
  0x12   :  { %555 = vmatpush3.bf16.msra.mxu1 %v612_v21 }
  0x13   :  { %517 = vmatpush3.bf16.msra.mxu0 %v599_v10  ;;  %556 = vmatprep.subr.bf16.mxu1 %v633_v1 }
  0x14   :  { %518 = vmatprep.subr.bf16.mxu0 %v600_v11 }
  0x16   :  { %557 = vmatpush3.bf16.msra.mxu1 %v613_v23 }
  0x17   :  { %519 = vmatpush3.bf16.msra.mxu0 %v601_v12  ;;  %558 = vmatprep.subr.bf16.mxu1 %v633_v1 }
  0x18   :  { %520 = vmatprep.subr.bf16.mxu0 %v602_v15 }
  0x1a   :  { %559 = vmatpush3.bf16.msra.mxu1 %v614_v24 }
  0x1b   :  { %521 = vmatpush3.bf16.msra.mxu0 %v603_v17  ;;  %560 = vmatprep.subr.bf16.mxu1 %v633_v1 }
  0x1c   :  { %522 = vmatprep.subr.bf16.mxu0 %v604_v18 }
  0x1e   :  { %561 = vmatpush3.bf16.msra.mxu1 %v615_v25 }
  0x1f   :  { %523 = vmatpush3.bf16.msra.mxu0 %v605_v20  ;;  %562 = vmatprep.subr.bf16.mxu1 %v633_v1 }
  0x20   :  { %568 = vmatprep.subr.bf16.mxu0 %v633_v1 }
  0x22   :  { %207 = vmatmul.mubr.bf16.vlgmr.msra.gmra.mxu0 %v606_v22  ;;  %563 = vmatpush3.bf16.msra.mxu1 %v616_v26 }
  0x23   :  { %584 = vmatprep.mubr.msk.bf16.mxu0 %vm634_vm0, %v633_v1  ;;  %569 = vmatpush3.bf16.msra.mxu0 %v617_v27 }
  0x24   :  { %570 = vmatprep.subr.bf16.mxu0 %v633_v1 }
  0x27   :  { %571 = vmatpush3.bf16.msra.mxu0 %v618_v28 }
  0x28   :  { %572 = vmatprep.subr.bf16.mxu0 %v633_v1 }
  0x2b   :  { %573 = vmatpush3.bf16.msra.mxu0 %v619_v29 }
  0x2c   :  { %574 = vmatprep.subr.bf16.mxu0 %v633_v1 }
  0x2f   :  { %575 = vmatpush3.bf16.msra.mxu0 %v620_v30 }
  0x30   :  { %576 = vmatprep.subr.bf16.mxu0 %v633_v1 }
  0x33   :  { %577 = vmatpush3.bf16.msra.mxu0 %v621_v31 }
  0x34   :  { %578 = vmatprep.subr.bf16.mxu0 %v633_v1 }
  0x37   :  { %579 = vmatpush3.bf16.msra.mxu0 %v622_v44 }
  0x38   :  { %580 = vmatprep.subr.bf16.mxu0 %v633_v1 }
  0x3b   :  { %581 = vmatpush3.bf16.msra.mxu0 %v623_v45 }
  0x3c   :  { %582 = vmatprep.subr.bf16.mxu0 %v633_v1 }
  0x3f   :  { %583 = vmatpush3.bf16.msra.mxu0 %v624_v46 }
  0xe2   :  { %v524_v32 = vpop.f32.mrf.mxu0 }
  0xe4   :  { %v525_v33 = vpop.f32.mrf.mxu0 }
  0xe5   :  { %v526_v34 = vadd.f32 %v525_v33, %v524_v32 }
  0xe6   :  { %v527_v36 = vpop.f32.mrf.mxu0 }
  0xe7   :  { %v209_v38 = vadd.f32 %v526_v34, %v471_v35 }
  0xe8   :  { %v528_v37 = vpop.f32.mrf.mxu0 }
  0xe9   :  { %v529_v39 = vadd.f32 %v528_v37, %v527_v36  ;;  %v215_v41 = vmax.f32 %v209_v38, 0.0 }
  0xeb   :  { %v212_v40 = vadd.f32 %v529_v39, %v471_v35 }
  0xed   :  { %v216_v42 = vmax.f32 %v212_v40, 0.0 }
  0xef   :  { %v217_v43 = vpack.c.bf16 %v216_v42, %v215_v41 }
  0xf1   :  { %565 = vmatmul.mubr.bf16.vlgmr.msra.gmra.mxu1 %v217_v43 }
 0x1b1   :  { %v323_v48 = vpop.f32.mrf.mxu1 }
 0x1b2   :  { %v324_v50 = vadd.f32 %v490_v47, %v323_v48 }
 0x1b3   :  { %v566_v49 = vpop.f32.mrf.mxu1 }
 0x1b4   :  { %v330_v54 = vmax.f32 %v324_v50, 0.0 }
 0x1b5   :  { %v326_v51 = vpop.f32.mrf.mxu1 }
 0x1b6   :  { %v327_v52 = vadd.f32 %v490_v47, %v326_v51 }
 0x1b7   :  { %v567_v53 = vpop.f32.mrf.mxu1 }
 0x1b8   :  { %v331_v55 = vmax.f32 %v327_v52, 0.0 }
 0x1ba   :  { %v332_v56 = vpack.c.bf16 %v331_v55, %v330_v54 }
 0x1bc   :  { %585 = vmatmul.mubr.bf16.vlgmr.msra.gmra.mxu0 %v332_v56 }
 0x27c   :  { %v438_v58 = vpop.f32.mrf.mxu0 }
 0x27d   :  { %v439_v59 = vadd.f32 %v499_v57, %v438_v58 }
 0x27e   :  { %v586_v60 = vpop.f32.mrf.mxu0 }
 0x27f   :  { %445 = vmax.xlane.f32.xlu0 %v439_v59 }
 0x280   :  { %v441_v61 = vpop.f32.mrf.mxu0 }
 0x281   :  { %v442_v62 = vadd.f32 %v499_v57, %v441_v61 }
 0x282   :  { %v587_v63 = vpop.f32.mrf.mxu0 }
 0x283   :  { %447 = vmax.xlane.f32.xlu0 %v442_v62 }
 0x308   :  { %v446_v0 = vpop.xlane.xlu0 %445 }
 0x309   :  { %v449_v1 = vsub.f32 %v439_v59, %v446_v0 }
 0x30b   :  { %v451_v2 = vmul.f32 1.442695, %v449_v1 }
 0x30c   :  { %v448_v3 = vpop.xlane.xlu0 %447 }
 0x30d   :  { %v450_v4 = vsub.f32 %v442_v62, %v448_v3  ;;  %625 = vpow2.f32 %v451_v2 }
 0x30f   :  { %v453_v5 = vmul.f32 1.442695, %v450_v4 }
 0x311   :  { %627 = vpow2.f32 %v453_v5 }
 0x31a   :  { %v626_v6 = vpop.eup %625 }
 0x31b   :  { %455 = vadd.xlane.f32.xlu1 %v626_v6 }
 0x31e   :  { %v628_v7 = vpop.eup %627 }
 0x31f   :  { %457 = vadd.xlane.f32.xlu1 %v628_v7 }
 0x3a4   :  { %v456_v8 = vpop.xlane.xlu1 %455 }
 0x3a5   :  { %629 = vlog2.f32 %v456_v8 }
 0x3a8   :  { %v458_v9 = vpop.xlane.xlu1 %457 }
 0x3a9   :  { %631 = vlog2.f32 %v458_v9 }
 0x3b2   :  { %v630_v10 = vpop.eup %629 }
 0x3b3   :  { %v460_v11 = vmul.f32 0.6931472, %v630_v10 }
 0x3b5   :  { %v463_v12 = vsub.f32 %v449_v1, %v460_v11 }
 0x3b6   :  { %v632_v13 = vpop.eup %631 }
 0x3b7   :  { %465 = vst [vmem:[%s817_s7] sm:$0xff] %v463_v12  ;;  %v462_v14 = vmul.f32 0.6931472, %v632_v13 }
 0x3b9   :  { %v464_v15 = vsub.f32 %v450_v4, %v462_v14 }
 0x3bb   :  { %466 = vst [vmem:[%s817_s7 + $0x8] sm:$0xff] %v464_v15 }

</bundles_post_ra>
